<compile_context>
chip_gen: v6e
topology: v6e:2x2x1
jax: 0.10.0
libtpu: 0.0.40
codegen_flags: <defaults>
</compile_context>

<pallas_src>
import numpy as np
import jax
import jax.numpy as jnp
from jax import lax
from jax.experimental import pallas as pl
from jax.experimental.pallas import tpu as pltpu


def _out_len(L, k, s, p, d):
    return (L + 2 * p - d * (k - 1) - 1) // s + 1


def _round_up(x, m):
    return ((x + m - 1) // m) * m


def _pick_b_tile(N, cap):
    """Largest divisor of N that fits the VMEM cap; keep >= 2 grid steps when N >= 2."""
    upper = min(cap, N)
    if N >= 2:
        upper = min(upper, N // 2)     # grid >= 2 so "parallel" splits across 2 TCs (v7x)
    upper = max(upper, 1)
    bt = upper
    while N % bt != 0:
        bt -= 1
    return bt


def make_conv_pool_kernel(C_in, C_pad, B_TILE, L_conv, L_pool,
                          kernel_conv, stride_conv, dilation_conv,
                          kernel_pool, stride_pool, pool_padding, dilation_pool):
    KC = kernel_conv * C_in

    def kernel(x_ref, w_ref, b_ref, y_ref, mvp_ref):
        # ---- in-register im2col over the whole batch tile: ONE MXU matmul ----
        # x_ref: (B_TILE, L + 2*conv_padding, C_in)  (conv zero-pad done in wrapper)
        taps = []
        for k in range(kernel_conv):
            s = k * dilation_conv
            if stride_conv == 1:
                xk = x_ref[:, s:s + L_conv, :]                       # (B_TILE, L_conv, C_in)
            else:
                # strided sublane read straight from the padded block (no value relayout)
                xk = x_ref[:, pl.ds(s, L_conv, stride=stride_conv), :]
            taps.append(xk)
        cols = taps[0] if kernel_conv == 1 else jnp.concatenate(taps, axis=2)
        cols = cols.reshape(B_TILE * L_conv, KC)
        conv = jnp.dot(cols, w_ref[...],
                       preferred_element_type=jnp.float32)           # (B*L_conv, C_pad)
        conv = jnp.maximum(conv + b_ref[...], 0.0)                   # bias + ReLU
        conv = conv.reshape(B_TILE, L_conv, C_pad)

        # ---- MaxPool1d fully in-register ----
        if pool_padding == 0 and dilation_pool == 1 and stride_pool == kernel_pool:
            pooled = conv[:, :L_pool * kernel_pool, :].reshape(
                B_TILE, L_pool, kernel_pool, C_pad).max(axis=2)
        else:
            # general path: -inf halo of exactly pool_padding + strided window slices
            if pool_padding > 0:
                halo = jnp.full((B_TILE, pool_padding, C_pad), -jnp.inf, jnp.float32)
                padded = jnp.concatenate([halo, conv, halo], axis=1)
            else:
                padded = conv
            pooled = None
            for m in range(kernel_pool):
                s = m * dilation_pool
                win = lax.slice_in_dim(
                    padded, s, s + (L_pool - 1) * stride_pool + 1,
                    stride=stride_pool, axis=1)                      # (B_TILE, L_pool, C_pad)
                pooled = win if pooled is None else jnp.maximum(pooled, win)

        # lane-dense (C_pad multiple of 128) unmasked store
        y_ref[...] = pooled

        # one partial max per TILE (pooled >= 0 post-ReLU; padded channels are 0,
        # so abs() and the padded lanes never change the result)
        mvp_ref[...] = jnp.max(pooled).reshape(1, 1, 1)

        # TODO(synk): training-mode dropout (Bernoulli mask via pltpu.prng_random_bits)
        # not implemented; nn.Dropout in eval mode is the identity, which is what we emit.

    return kernel


def conv_pool_forward(x, max_value, w, b, *,
                      stride_conv, conv_padding, dilation_conv,
                      kernel_pool, stride_pool, pool_padding, dilation_pool,
                      vmem_budget_bytes=12 * (1 << 20)):
    """x: (N, C_in, L) NCL like PyTorch. Returns (y: (N, C_out, L_pool), max_value)."""
    N, C_in, L = x.shape
    C_out, _, K = w.shape
    L_conv = _out_len(L, K, stride_conv, conv_padding, dilation_conv)
    L_pool = _out_len(L_conv, kernel_pool, stride_pool, pool_padding, dilation_pool)
    C_pad = _round_up(C_out, 128)              # lane-dense output width
    KC = K * C_in
    L_x = L + 2 * conv_padding                 # wrapper-padded input length

    # ---- generation-aware batch tile from a VMEM byte budget ----
    per_row = 4 * (2 * (L_x * C_in + L_pool * C_pad)   # double-buffered x / y blocks
                   + L_conv * C_pad                    # conv f32 intermediate
                   + L_conv * KC)                      # im2col cols
    fixed = 4 * 2 * (KC * C_pad + C_pad)               # weights + bias (double-buffered)
    cap = max(1, (vmem_budget_bytes - fixed) // per_row)
    B_TILE = _pick_b_tile(N, cap)
    G = N // B_TILE

    # single wrapper layout pass: NCL->NLC transpose + f32 cast + conv zero-pad (XLA-fused)
    x_nlc = jnp.transpose(x, (0, 2, 1)).astype(jnp.float32)           # (N, L, C_in)
    if conv_padding > 0:
        x_nlc = jnp.pad(x_nlc, ((0, 0), (conv_padding, conv_padding), (0, 0)))
    w_flat = jnp.transpose(w, (2, 1, 0)).reshape(KC, C_out).astype(jnp.float32)
    w_p = jnp.zeros((KC, C_pad), jnp.float32).at[:, :C_out].set(w_flat)   # (KC, C_pad)
    b_p = jnp.zeros((1, C_pad), jnp.float32).at[0, :C_out].set(b.astype(jnp.float32))

    kernel = make_conv_pool_kernel(
        C_in, C_pad, B_TILE, L_conv, L_pool,
        K, stride_conv, dilation_conv,
        kernel_pool, stride_pool, pool_padding, dilation_pool)

    compiler_kwargs = dict(dimension_semantics=("parallel",))
    est_vmem = fixed + per_row * B_TILE
    if est_vmem > 12 * (1 << 20):
        # only when the caller raised vmem_budget_bytes (e.g. big tiles on v6e):
        # lift the scoped-VMEM limit above the 16/32 MiB defaults.
        compiler_kwargs["vmem_limit_bytes"] = int(est_vmem * 3 // 2)

    y_p, mv_part = pl.pallas_call(
        kernel,
        out_shape=(jax.ShapeDtypeStruct((N, L_pool, C_pad), jnp.float32),
                   jax.ShapeDtypeStruct((G, 1, 1), jnp.float32)),
        grid=(G,),
        in_specs=[
            pl.BlockSpec((B_TILE, L_x, C_in), lambda i: (i, 0, 0)),    # batch tile / step
            pl.BlockSpec((KC, C_pad), lambda i: (0, 0)),               # weights (resident)
            pl.BlockSpec((1, C_pad), lambda i: (0, 0)),                # bias (resident)
        ],
        out_specs=(
            pl.BlockSpec((B_TILE, L_pool, C_pad), lambda i: (i, 0, 0)),
            pl.BlockSpec((1, 1, 1), lambda i: (i, 0, 0)),              # per-tile partial max
        ),
        compiler_params=pltpu.CompilerParams(**compiler_kwargs),
    )(x_nlc, w_p, b_p)

    y = jnp.transpose(y_p[:, :, :C_out], (0, 2, 1))        # strip lane pad, back to NCL
    mv_out = jnp.maximum(jnp.max(mv_part), jnp.asarray(max_value, jnp.float32))
    return y, mv_out


if __name__ == "__main__":
    # module hyper-parameters (small, consistent with ConvPoolModule.__init__)
    N, C_in, L = 2, 4, 32
    C_out, kernel_conv = 8, 3
    stride_conv, conv_padding, dilation_conv = 1, 1, 1
    kernel_pool, stride_pool, pool_padding, dilation_pool = 2, 2, 0, 1
    dropout_p = 0.5  # eval-mode dropout == identity

    key = jax.random.PRNGKey(0)
    kx, kw, kb = jax.random.split(key, 3)
    x = jax.random.normal(kx, (N, C_in, L), jnp.float32)
    fan_in = C_in * kernel_conv
    bound = 1.0 / np.sqrt(fan_in)  # PyTorch Conv1d default init bound (deterministic here)
    w = jax.random.uniform(kw, (C_out, C_in, kernel_conv), jnp.float32, -bound, bound)
    b = jax.random.uniform(kb, (C_out,), jnp.float32, -bound, bound)
    max_value = jnp.float32(0.0)

    y, mv = conv_pool_forward(
        x, max_value, w, b,
        stride_conv=stride_conv, conv_padding=conv_padding, dilation_conv=dilation_conv,
        kernel_pool=kernel_pool, stride_pool=stride_pool,
        pool_padding=pool_padding, dilation_pool=dilation_pool)
    y = jax.block_until_ready(y)
    mv = jax.block_until_ready(mv)

    # pure-JAX reference (same semantics as the PyTorch forward, eval mode)
    y_ref = lax.conv_general_dilated(
        x, w, window_strides=(stride_conv,), padding=[(conv_padding, conv_padding)],
        rhs_dilation=(dilation_conv,), dimension_numbers=("NCH", "OIH", "NCH"))
    y_ref = jnp.maximum(y_ref + b[None, :, None], 0.0)
    y_ref = lax.reduce_window(
        y_ref, -jnp.inf, lax.max,
        window_dimensions=(1, 1, kernel_pool),
        window_strides=(1, 1, stride_pool),
        padding=[(0, 0), (0, 0), (pool_padding, pool_padding)],
        window_dilation=(1, 1, dilation_pool))
    mv_ref = jnp.maximum(jnp.max(jnp.abs(y_ref)), max_value)

    assert y.shape == y_ref.shape, (y.shape, y_ref.shape)
    np.testing.assert_allclose(np.asarray(y), np.asarray(y_ref), rtol=1e-5, atol=1e-5)
    np.testing.assert_allclose(float(mv), float(mv_ref), rtol=1e-5, atol=1e-5)
    print("KERNEL_OK")
</pallas_src>

<mosaic_0001>
module attributes {stable_mosaic.version = 11 : i64} {
  func.func @kernel(%arg0: i32, %arg1: memref<1x34x4xf32, #tpu.memory_space<vmem>>, %arg2: memref<12x128xf32, #tpu.memory_space<vmem>>, %arg3: memref<1x128xf32, #tpu.memory_space<vmem>>, %arg4: memref<1x16x128xf32, #tpu.memory_space<vmem>>, %arg5: memref<1x1x1xf32, #tpu.memory_space<vmem>>) attributes {dimension_semantics = [#tpu.dimension_semantics<parallel>], iteration_bounds = array<i64: 2>, scalar_prefetch = 0 : i64, scratch_operands = 0 : i64, tpu.core_type = #tpu.core_type<tc>, window_params = [{transform_indices = @transform_0, window_bounds = array<i64: 1, 34, 4>}, {pipeline_mode = #tpu.pipeline_mode<synchronous>, transform_indices = @transform_1, window_bounds = array<i64: 12, 128>}, {pipeline_mode = #tpu.pipeline_mode<synchronous>, transform_indices = @transform_2, window_bounds = array<i64: 1, 128>}, {transform_indices = @transform_3, window_bounds = array<i64: 1, 16, 128>}, {transform_indices = @transform_4, window_bounds = array<i64: 1, 1, 1>}]} {
    %c0 = arith.constant 0 : index
    %c0_0 = arith.constant 0 : index
    %c0_1 = arith.constant 0 : index
    %0 = vector.load %arg1[%c0, %c0_0, %c0_1] : memref<1x34x4xf32, #tpu.memory_space<vmem>>, vector<1x32x4xf32>
    %c0_2 = arith.constant 0 : index
    %c1 = arith.constant 1 : index
    %c0_3 = arith.constant 0 : index
    %1 = vector.load %arg1[%c0_2, %c1, %c0_3] : memref<1x34x4xf32, #tpu.memory_space<vmem>>, vector<1x32x4xf32>
    %c0_4 = arith.constant 0 : index
    %c2 = arith.constant 2 : index
    %c0_5 = arith.constant 0 : index
    %2 = vector.load %arg1[%c0_4, %c2, %c0_5] : memref<1x34x4xf32, #tpu.memory_space<vmem>>, vector<1x32x4xf32>
    %3 = tpu.concatenate %0, %1, %2 in 2 : vector<1x32x4xf32>, vector<1x32x4xf32>, vector<1x32x4xf32> -> vector<1x32x12xf32>
    %4 = vector.shape_cast %3 : vector<1x32x12xf32> to vector<32x12xf32>
    %c0_6 = arith.constant 0 : index
    %c0_7 = arith.constant 0 : index
    %5 = vector.load %arg2[%c0_6, %c0_7] : memref<12x128xf32, #tpu.memory_space<vmem>>, vector<12x128xf32>
    %cst = arith.constant dense<0.000000e+00> : vector<32x128xf32>
    %6 = tpu.matmul %4, %5, %cst {dimension_numbers = #tpu.dot_dimension_numbers<[1], [0], [0], [1], [0, 0, 1, 1], [], []>} : vector<32x12xf32>, vector<12x128xf32>, vector<32x128xf32> -> vector<32x128xf32>
    %c0_8 = arith.constant 0 : index
    %c0_9 = arith.constant 0 : index
    %7 = vector.load %arg3[%c0_8, %c0_9] : memref<1x128xf32, #tpu.memory_space<vmem>>, vector<1x128xf32>
    %8 = vector.broadcast %7 : vector<1x128xf32> to vector<32x128xf32>
    %9 = arith.addf %6, %8 : vector<32x128xf32>
    %cst_10 = arith.constant 0.000000e+00 : f32
    %10 = vector.broadcast %cst_10 : f32 to vector<32x128xf32>
    %11 = arith.maximumf %9, %10 : vector<32x128xf32>
    %12 = vector.shape_cast %11 : vector<32x128xf32> to vector<1x32x128xf32>
    %13 = vector.shape_cast %12 : vector<1x32x128xf32> to vector<1x16x2x128xf32>
    %cst_11 = arith.constant dense<0xFF800000> : vector<1x16x128xf32>
    %14 = vector.multi_reduction <maximumf>, %13, %cst_11 [2] : vector<1x16x2x128xf32> to vector<1x16x128xf32>
    %c0_12 = arith.constant 0 : index
    %c0_13 = arith.constant 0 : index
    %c0_14 = arith.constant 0 : index
    %15 = vector.load %arg4[%c0_12, %c0_13, %c0_14] : memref<1x16x128xf32, #tpu.memory_space<vmem>>, vector<1x16x128xf32>
    tpu.vector_store %arg4[%c0_12, %c0_13, %c0_14], %14 {strides = array<i32>} : memref<1x16x128xf32, #tpu.memory_space<vmem>>, vector<1x16x128xf32>,
    %16 = vector.shape_cast %14 : vector<1x16x128xf32> to vector<1x1x16x128xf32>
    %cst_15 = arith.constant dense<0xFF800000> : vector<1xf32>
    %17 = vector.multi_reduction <maximumf>, %16, %cst_15 [1, 2, 3] : vector<1x1x16x128xf32> to vector<1xf32>
    %18 = vector.shape_cast %17 : vector<1xf32> to vector<1x1x1x1xf32>
    %19 = vector.extract %18[0, 0, 0, 0] : f32 from vector<1x1x1x1xf32>
    %20 = vector.broadcast %19 : f32 to vector<1x1x1xf32>
    %c0_16 = arith.constant 0 : index
    %c0_17 = arith.constant 0 : index
    %c0_18 = arith.constant 0 : index
    %21 = vector.load %arg5[%c0_16, %c0_17, %c0_18] : memref<1x1x1xf32, #tpu.memory_space<vmem>>, vector<1x1x1xf32>
    tpu.vector_store %arg5[%c0_16, %c0_17, %c0_18], %20 {strides = array<i32>} : memref<1x1x1xf32, #tpu.memory_space<vmem>>, vector<1x1x1xf32>,
    return
  }
  func.func @transform_0(%arg0: i32) -> (i32, i32, i32) {
    %c0_i32 = arith.constant 0 : i32
    %c0_i32_0 = arith.constant 0 : i32
    %c0_i32_1 = arith.constant 0 : i32
    return %arg0, %c0_i32, %c0_i32_0 : i32, i32, i32
  }
  func.func @transform_1(%arg0: i32) -> (i32, i32) {
    %c0_i32 = arith.constant 0 : i32
    %c0_i32_0 = arith.constant 0 : i32
    %c0_i32_1 = arith.constant 0 : i32
    return %c0_i32, %c0_i32_0 : i32, i32
  }
  func.func @transform_2(%arg0: i32) -> (i32, i32) {
    %c0_i32 = arith.constant 0 : i32
    %c0_i32_0 = arith.constant 0 : i32
    %c0_i32_1 = arith.constant 0 : i32
    return %c0_i32, %c0_i32_0 : i32, i32
  }
  func.func @transform_3(%arg0: i32) -> (i32, i32, i32) {
    %c0_i32 = arith.constant 0 : i32
    %c0_i32_0 = arith.constant 0 : i32
    %c0_i32_1 = arith.constant 0 : i32
    return %arg0, %c0_i32, %c0_i32_0 : i32, i32, i32
  }
  func.func @transform_4(%arg0: i32) -> (i32, i32, i32) {
    %c0_i32 = arith.constant 0 : i32
    %c0_i32_0 = arith.constant 0 : i32
    %c0_i32_1 = arith.constant 0 : i32
    return %arg0, %c0_i32, %c0_i32_0 : i32, i32, i32
  }
}

</mosaic_0001>

<bundles_post_ra>
// kernel: tpu_custom_call.1
= control target key start
LH: loop header
LB: loop body
LE: loop exit
PB: predicated region body
PF: predicated region fallthrough
CT: control target
= control target key end

     0   :  { %10 = vsyncpa [#allocation3], 0  ;;  %s1123_s0 = inlined_call_operand.vmem [shape: f32[2,34,4], index: 0, kind: input, shape index: {}]   ;;  %s1124_s1 = inlined_call_operand.vmem [shape: f32[12,128], index: 1, kind: input, shape index: {}]   ;;  %s1125_s2 = inlined_call_operand.vmem [shape: f32[1,128], index: 2, kind: input, shape index: {}]   ;;  %s1126_s3 = inlined_call_operand.hbm [shape: f32[2,16,128], index: 3, kind: output, shape index: {0}]   ;;  %s1127_s4 = inlined_call_operand.vmem [shape: f32[2,1,1], index: 4, kind: output, shape index: {1}]  }
   0x1   :  { %12 = vsyncpa [#allocation3 + $0x1], 0  ;;  %s914_s15 = smov 0   ;;  %s916_s16 = smov 0  }
   0x2   :  { %s918_s17 = smov 0   ;;  %s920_s18 = smov 0  }
   0x3 LB: > { %s935_s19 = sadd.s32 4294967295, %s882_s18   ;;  %s738_s20 = sadd.s32 4294967294, %s882_s18   ;;  %s882_s18 = sphi %s920_s18, %s1133_s18   ;;  %s878_s17 = sphi %s918_s17, %s1132_s17   ;;  %s874_s16 = sphi %s916_s16, %s1131_s16   ;;  %s870_s15 = sphi %s914_s15, %s1130_s15  }
   0x4   : > { %s939_s21 = sadd.s32 1, %s882_s18   ;;  %s93_s22 = sadd.s32 1, %s878_s17 }
   0x5   : > { %s90_s23 = ssub.s32 %s882_s18, %s939_s21  ;;  %p103_p0 = scmp.ne.s32.totalorder %s878_s17, %s874_s16 }
   0x6   : > { %p91_p1 = scmp.eq.s32.totalorder %s90_s23, 0  ;;  %p104_p2 = scmp.eq.s32.totalorder %s935_s19, 1 }
   0x7   : > { %p109_p3 = scmp.ne.s32.totalorder %s874_s16, %s870_s15  ;;  %p110_p4 = scmp.eq.s32.totalorder %s738_s20, 1 }
   0x8   : > { %s950_s24 = scalar_select %p91_p1, %s878_s17, %s93_s22  }
   0x9   : > { %p952_p5 = por %p104_p2, %p103_p0  ;;  %p956_p6 = por %p110_p4, %p109_p3 }
   0xa   : > { %p741_p7 = scmp.ge.s32.totalorder %s882_s18, 1  ;;  %p168_p8 = scmp.lt.s32.totalorder %s882_s18, 3 }
   0xc   : > { %p169_p9 = pnand %p741_p7, %p168_p8 }
   0xd   : > { %p197_p10 = scmp.lt.s32.totalorder (!%p169_p9), %s935_s19, 1  ;;  %s884_s10 = smov (!%p169_p9), 8  }
   0xe   : > { %172 = sbr.rel (%p169_p9) target bundleno = 583 (0x247), region = 32  ;;  %s885_s11 = smov (!%p169_p9), 4  }
   0xf   : > { %s189_s14 = sand.u32 (!%p169_p9), 1, %s874_s16   ;;  %s755_s23 = sshll.u32 (!%p169_p9), %s935_s19, 8 }
  0x10   : > { %s742_s20 = sshll.u32 (!%p169_p9), %s189_s14, 4  ;;  %s1072_s29 = scalar_lea.hbm (!%p169_p9), %s1126_s3, %s755_s23 }
  0x11   : > { %s191_s22 = scalar_lea.vmem (!%p169_p9), [#allocation2], %s742_s20 }
  0x12   : > { %s654_s30 = sshll.u32 (!%p169_p9), %s191_s22, 4  ;;  %s1074_s30 = int_to_ptr.vmem [resolvable:$true] %s654_s30 }
  0x13   : > { %vm281_vm0 = vcmask 1043456   ;;  %v260_v0 = vld [vmem:[%s1124_s1 + $0x8] sm:$0xf]  ;;  %v259_v1 = vld [vmem:[%s1124_s1] sm:$0xff]  ;;  %s970_s5 = scalar_select %p197_p10, %s935_s19, 1  ;;  %vm249_vm1 = vcmask 31744   ;;  %v382_v32 = vlaneseq }
  0x14   : > { %762 = vmatprep.subr.msk.mxu0 %vm281_vm0, %v260_v0  ;;  %772 = vmatprep.subr.msk.mxu1 %vm281_vm0, %v260_v0  ;;  %vm254_vm2 = vcmask 64512   ;;  %vm268_vm3 = vcmask 97280   ;;  %v886_v30 = vmov 1983009808   ;;  %v744_v35 = vld [vmem:[%s1125_s2] ss:$0 sm:$0xff] }
  0x15   : > { %763 = vmatpush3.msk.msra.mxu0 %vm281_vm0, %v260_v0  ;;  %774 = vmatpush3.msk.msra.mxu1 %vm281_vm0, %v260_v0  ;;  %s776_s6 = smul.u32 40, %s970_s5  ;;  %v380_v31 = vunpack.c.l.s4 %v886_v30  ;;  %v383_v34 = vshrl.u32 %v382_v32, 7  ;;  %vm462_vm4 = vcmask 1041408   ;;  %vm591_vm5 = vcmask 1041409   ;;  %s822_s7 = scalar_lea.vmem %s1074_s30, 256 }
  0x16   : > { %764 = vmatprep.subr.mxu0 %v259_v1  ;;  %773 = vmatprep.subr.mxu1 %v259_v1  ;;  %vm593_vm6 = vcmask 1042434   ;;  %vm595_vm7 = vcmask 1043459   ;;  %vm597_vm8 = vcmask 1044484   ;;  %vm599_vm9 = vcmask 1045509   ;;  %p823_p11 = scmp.ne.s32.totalorder %s1074_s30, %s822_s7  ;;  %s887_s19 = smov [#allocation2]  }
  0x17   : > { %765 = vmatpush3.msra.mxu0 %v259_v1  ;;  %775 = vmatpush3.msra.mxu1 %v259_v1  ;;  %s976_s9 = scalar_lea.vmem %s1123_s0, %s776_s6  ;;  %v381_v33 = vunpack.c.0.s8 %v380_v31  ;;  %vm601_vm10 = vcmask 1046534   ;;  %vm603_vm11 = vcmask 1047559   ;;  %s1078_s6 = scalar_lea.sflag [#allocation3], %s189_s14 }
  0x18   : > { %v213_v2 = vld [vmem:[%s976_s9 + $0x2] sm:$0xff]  ;;  %v211_v4 = vld [vmem:[%s976_s9 + $0x11] sm:$0xff]  ;;  %v212_v6 = vld [vmem:[%s976_s9 + $0x19] sm:$0xff]  ;;  %p824_p12 = pnand %p823_p11, %p952_p5  ;;  %s826_s8 = sshll.u32 %s887_s19, 4  ;;  %s827_s8 = int_to_ptr.vmem [resolvable:$false] %s826_s8 }
  0x19   : > { %v209_v3 = vld [vmem:[%s976_s9 + $0x1] sm:$0xff]  ;;  %237 = vrot.lane.b32.xlu1 %v213_v2, %s884_s10  ;;  %v210_v5 = vld [vmem:[%s976_s9 + $0x9] sm:$0xff]  ;;  %v215_v9 = vld [vmem:[%s976_s9 + $0x12] sm:$0xff]  ;;  %v1009_v38 = vsub.s32 %v381_v33, %v383_v34  ;;  %p829_p0 = scmp.lt.s32.totalorder %s1074_s30, %s827_s8 }
  0x1a   : > { %221 = vrot.lane.b32.xlu0 %v209_v3, %s885_s11  ;;  %v214_v7 = vld [vmem:[%s976_s9 + $0xa] sm:$0xff]  ;;  %v216_v8 = vld [vmem:[%s976_s9 + $0x1a] sm:$0xff]  ;;  %p825_p13 = pneg %p824_p12 }
  0x1b   : > { %v205_v10 = vld [vmem:[%s976_s9] sm:$0xff]  ;;  %v206_v17 = vld [vmem:[%s976_s9 + $0x8] sm:$0xff]  ;;  %v207_v21 = vld [vmem:[%s976_s9 + $0x10] sm:$0xff] }
  0x1c   : > { %v208_v22 = vld [vmem:[%s976_s9 + $0x18] sm:$0xff]  ;;  %s828_s9 = scalar_lea.vmem %s827_s8, 512 }
  0x1d   : > { %225 = vrot.lane.b32.xlu1 %v211_v4, %s885_s11  ;;  %p830_p1 = scmp.lt.s32.totalorder %s828_s9, %s822_s7 }
  0x1e   : > { %223 = vrot.lane.b32.xlu0 %v210_v5, %s885_s11 }
  0x1f   : > { %p831_p2 = por %p830_p1, %p829_p0 }
  0x21   : > { %227 = vrot.lane.b32.xlu1 %v212_v6, %s885_s11  ;;  %p832_p3 = pnand %p831_p2, %p825_p13 }
  0x22   : > { %239 = vrot.lane.b32.xlu0 %v214_v7, %s884_s10 }
  0x25   : > { %243 = vrot.lane.b32.xlu1 %v216_v8, %s884_s10 }
  0x26   : > { %241 = vrot.lane.b32.xlu0 %v215_v9, %s884_s10 }
  0x8b   : > { %v238_v11 = vpop.permute.xlu1 %237 }
  0x8c   : > { %v222_v12 = vpop.permute.xlu0 %221 }
  0x8d   : > { %v250_v13 = vsel %vm249_vm1, %v205_v10, %v222_v12 }
  0x8e   : > { %v255_v14 = vsel %vm254_vm2, %v250_v13, %v238_v11 }
  0x8f   : > { %766 = vmatprep.mubr.msk.f32.mxu0 %vm268_vm3, %v255_v14  ;;  %v226_v15 = vpop.permute.xlu1 %225 }
  0x90   : > { %v224_v16 = vpop.permute.xlu0 %223  ;;  %v252_v24 = vsel %vm249_vm1, %v207_v21, %v226_v15 }
  0x91   : > { %v251_v18 = vsel %vm249_vm1, %v206_v17, %v224_v16 }
  0x93   : > { %v228_v19 = vpop.permute.xlu1 %227 }
  0x94   : > { %v240_v20 = vpop.permute.xlu0 %239  ;;  %v253_v25 = vsel %vm249_vm1, %v208_v22, %v228_v19 }
  0x95   : > { %v256_v23 = vsel %vm254_vm2, %v251_v18, %v240_v20 }
  0x96   : > { %767 = vmatmul.mubr.msk.f32.vlgmr.msra.gmra.mxu0 %vm268_vm3, %v256_v23 }
  0x97   : > { %v244_v26 = vpop.permute.xlu1 %243 }
  0x98   : > { %v242_v27 = vpop.permute.xlu0 %241  ;;  %v258_v28 = vsel %vm254_vm2, %v253_v25, %v244_v26 }
  0x99   : > { %v257_v29 = vsel %vm254_vm2, %v252_v24, %v242_v27 }
  0x9a   : > { %769 = vmatprep.mubr.msk.f32.mxu1 %vm268_vm3, %v257_v29 }
  0x9b   : > { %770 = vmatmul.mubr.msk.f32.vlgmr.msra.gmra.mxu1 %vm268_vm3, %v258_v28 }
 0x156   : > { %v768_v36 = vpop.f32.mrf.mxu0 }
 0x157   : > { %v357_v37 = vadd.f32 %v768_v36, %v744_v35 }
 0x158   : > { %v351_v39 = vpop.f32.mrf.mxu0 }
 0x159   : > { %v371_v40 = vmax.f32 %v357_v37, 0.0  ;;  %v352_v41 = vadd.f32 %v744_v35, %v351_v39 }
 0x15b   : > { %v395_v42 = vcombine.high %v371_v40, %v371_v40  ;;  %v402_v43 = vrot.slane %v371_v40, %v1009_v38  ;;  %v370_v44 = vmax.f32 %v352_v41, 0.0  ;;  %v771_v45 = vpop.f32.mrf.mxu1 }
 0x15c   : > { %v367_v46 = vadd.f32 %v771_v45, %v744_v35 }
 0x15d   : > { %v409_v47 = vrot.slane %v395_v42, %v1009_v38  ;;  %v410_v48 = vcombine.high %v402_v43, %v402_v43  ;;  %v491_v49 = vsel %vm462_vm4, %v402_v43, -inf  ;;  %v378_v50 = vcombine.high %v370_v44, %v370_v44  ;;  %v361_v51 = vpop.f32.mrf.mxu1 }
 0x15e   : > { %v492_v52 = vrot.slane %v491_v49, 4  ;;  %v385_v53 = vrot.slane %v370_v44, %v1009_v38  ;;  %v373_v54 = vmax.f32 %v367_v46, 0.0  ;;  %v362_v55 = vadd.f32 %v744_v35, %v361_v51 }
 0x15f   : > { %v411_v56 = vcombine.high %v409_v47, %v409_v47  ;;  %v498_v57 = vsel %vm462_vm4, %v410_v48, -inf  ;;  %v505_v58 = vsel %vm462_vm4, %v409_v47, -inf  ;;  %v392_v59 = vrot.slane %v378_v50, %v1009_v38 }
 0x160   : > { %v493_v60 = vmax.f32 %v491_v49, %v492_v52  ;;  %v499_v61 = vrot.slane %v498_v57, 4  ;;  %v506_v62 = vrot.slane %v505_v58, 4  ;;  %v393_v63 = vcombine.high %v385_v53, %v385_v53 }
 0x161   : > { %v512_v0 = vsel %vm462_vm4, %v411_v56, -inf  ;;  %v394_v1 = vcombine.high %v392_v59, %v392_v59  ;;  %v463_v2 = vsel %vm462_vm4, %v385_v53, -inf  ;;  %v477_v3 = vsel %vm462_vm4, %v392_v59, -inf }
 0x162   : > { %v494_v4 = vrot.slane %v493_v60, 2  ;;  %v500_v5 = vmax.f32 %v498_v57, %v499_v61  ;;  %v507_v6 = vmax.f32 %v505_v58, %v506_v62  ;;  %v513_v7 = vrot.slane %v512_v0, 4 }
 0x163   : > { %v464_v8 = vrot.slane %v463_v2, 4  ;;  %v470_v9 = vsel %vm462_vm4, %v393_v63, -inf  ;;  %v478_v10 = vrot.slane %v477_v3, 4  ;;  %v484_v11 = vsel %vm462_vm4, %v394_v1, -inf }
 0x164   : > { %v495_v12 = vmax.f32 %v493_v60, %v494_v4  ;;  %v501_v13 = vrot.slane %v500_v5, 2  ;;  %v508_v14 = vrot.slane %v507_v6, 2  ;;  %v514_v15 = vmax.f32 %v512_v0, %v513_v7 }
 0x165   : > { %v465_v16 = vmax.f32 %v463_v2, %v464_v8  ;;  %v471_v17 = vrot.slane %v470_v9, 4  ;;  %v479_v18 = vmax.f32 %v477_v3, %v478_v10  ;;  %v485_v19 = vrot.slane %v484_v11, 4 }
 0x166   : > { %v496_v20 = vrot.slane %v495_v12, 1  ;;  %v502_v21 = vmax.f32 %v500_v5, %v501_v13  ;;  %v1023_v22 = vmax.f32 %v507_v6, %v508_v14  ;;  %v515_v23 = vrot.slane %v514_v15, 2 }
 0x167   : > { %v466_v24 = vrot.slane %v465_v16, 2  ;;  %v472_v25 = vmax.f32 %v470_v9, %v471_v17  ;;  %v480_v26 = vrot.slane %v479_v18, 2  ;;  %v486_v27 = vmax.f32 %v484_v11, %v485_v19 }
 0x168   : > { %v1025_v28 = vmax.f32 %v495_v12, %v496_v20  ;;  %v503_v29 = vrot.slane %v502_v21, 1  ;;  %v510_v30 = vrot.slane %v1023_v22, 1  ;;  %v1028_v35 = vmax.f32 %v514_v15, %v515_v23 }
 0x169   : > { %v467_v31 = vmax.f32 %v465_v16, %v466_v24  ;;  %v473_v32 = vrot.slane %v472_v25, 2  ;;  %v481_v33 = vmax.f32 %v479_v18, %v480_v26  ;;  %v487_v34 = vrot.slane %v486_v27, 2 }
 0x16a   : > { %v429_v36 = vcombine.high %v373_v54, %v373_v54  ;;  %v436_v37 = vrot.slane %v373_v54, %v1009_v38  ;;  %v372_v39 = vmax.f32 %v362_v55, 0.0  ;;  %v1031_v43 = vmax.f32 %v502_v21, %v503_v29 }
 0x16b   : > { %v468_v40 = vrot.slane %v467_v31, 1  ;;  %v474_v41 = vmax.f32 %v472_v25, %v473_v32  ;;  %v482_v42 = vrot.slane %v481_v33, 1  ;;  %v488_v49 = vmax.f32 %v486_v27, %v487_v34 }
 0x16c   : > { %v443_v44 = vrot.slane %v429_v36, %v1009_v38  ;;  %v444_v45 = vcombine.high %v436_v37, %v436_v37  ;;  %v547_v46 = vsel %vm462_vm4, %v436_v37, -inf  ;;  %v412_v47 = vcombine.high %v372_v39, %v372_v39 }
 0x16d   : > { %v475_v48 = vrot.slane %v474_v41, 1  ;;  %v548_v50 = vrot.slane %v547_v46, 4  ;;  %v419_v51 = vrot.slane %v372_v39, %v1009_v38  ;;  %v469_v7 = vmax.f32 %v467_v31, %v468_v40 }
 0x16e   : > { %v445_v52 = vcombine.high %v443_v44, %v443_v44  ;;  %v554_v53 = vsel %vm462_vm4, %v444_v45, -inf  ;;  %v561_v54 = vsel %vm462_vm4, %v443_v44, -inf  ;;  %v426_v55 = vrot.slane %v412_v47, %v1009_v38 }
 0x16f   : > { %v549_v56 = vmax.f32 %v547_v46, %v548_v50  ;;  %v555_v57 = vrot.slane %v554_v53, 4  ;;  %v562_v58 = vrot.slane %v561_v54, 4  ;;  %v427_v59 = vcombine.high %v419_v51, %v419_v51 }
 0x170   : > { %v568_v60 = vsel %vm462_vm4, %v445_v52, -inf  ;;  %v428_v61 = vcombine.high %v426_v55, %v426_v55  ;;  %v519_v62 = vsel %vm462_vm4, %v419_v51, -inf  ;;  %v533_v63 = vsel %vm462_vm4, %v426_v55, -inf }
 0x171   : > { %v550_v0 = vrot.slane %v549_v56, 2  ;;  %v556_v1 = vmax.f32 %v554_v53, %v555_v57  ;;  %v563_v2 = vmax.f32 %v561_v54, %v562_v58  ;;  %v569_v3 = vrot.slane %v568_v60, 4 }
 0x172   : > { %v520_v4 = vrot.slane %v519_v62, 4  ;;  %v526_v5 = vsel %vm462_vm4, %v427_v59, -inf  ;;  %v534_v38 = vrot.slane %v533_v63, 4  ;;  %v540_v6 = vsel %vm462_vm4, %v428_v61, -inf }
 0x173   : > { %v551_v8 = vmax.f32 %v549_v56, %v550_v0  ;;  %v557_v9 = vrot.slane %v556_v1, 2  ;;  %v564_v10 = vrot.slane %v563_v2, 2  ;;  %v527_v12 = vrot.slane %v526_v5, 4 }
 0x174   : > { %v521_v11 = vmax.f32 %v519_v62, %v520_v4  ;;  %v535_v13 = vmax.f32 %v533_v63, %v534_v38  ;;  %v541_v14 = vrot.slane %v540_v6, 4  ;;  %v570_v15 = vmax.f32 %v568_v60, %v569_v3 }
 0x175   : > { %v476_v16 = vmax.f32 %v474_v41, %v475_v48  ;;  %v483_v17 = vmax.f32 %v481_v33, %v482_v42  ;;  %v489_v18 = vrot.slane %v488_v49, 1  ;;  %v528_v20 = vmax.f32 %v526_v5, %v527_v12 }
 0x176   : > { %v522_v19 = vrot.slane %v521_v11, 2  ;;  %v536_v21 = vrot.slane %v535_v13, 2  ;;  %v542_v23 = vmax.f32 %v540_v6, %v541_v14  ;;  %v511_v24 = vmax.f32 %v1023_v22, %v510_v30 }
 0x177   : > { %v517_v25 = vrot.slane %v1028_v35, 1  ;;  %v552_v26 = vrot.slane %v551_v8, 1  ;;  %v558_v27 = vmax.f32 %v556_v1, %v557_v9  ;;  %v529_v31 = vrot.slane %v528_v20, 2 }
 0x178   : > { %v523_v29 = vmax.f32 %v521_v11, %v522_v19  ;;  %v537_v32 = vmax.f32 %v535_v13, %v536_v21  ;;  %v543_v34 = vrot.slane %v542_v23, 2  ;;  %v490_v36 = vmax.f32 %v488_v49, %v489_v18 }
 0x179   : > { %v518_v33 = vmax.f32 %v1028_v35, %v517_v25  ;;  %v559_v37 = vrot.slane %v558_v27, 1  ;;  %v565_v39 = vmax.f32 %v563_v2, %v564_v10  ;;  %v530_v41 = vmax.f32 %v528_v20, %v529_v31 }
 0x17a   : > { %v524_v40 = vrot.slane %v523_v29, 1  ;;  %v538_v22 = vrot.slane %v537_v32, 1  ;;  %v544_v30 = vmax.f32 %v542_v23, %v543_v34  ;;  %v553_v42 = vmax.f32 %v551_v8, %v552_v26 }
 0x17b   : > { %v560_v44 = vmax.f32 %v558_v27, %v559_v37  ;;  %v571_v45 = vrot.slane %v570_v15, 2  ;;  %v592_v46 = vsel %vm591_vm5, %v476_v16, %v469_v7  ;;  %v531_v48 = vrot.slane %v530_v41, 1 }
 0x17c   : > { %v525_v47 = vmax.f32 %v523_v29, %v524_v40  ;;  %v539_v50 = vmax.f32 %v537_v32, %v538_v22  ;;  %v545_v49 = vrot.slane %v544_v30, 1  ;;  %v566_v35 = vrot.slane %v565_v39, 1 }
 0x17d   : > { %v572_v51 = vmax.f32 %v570_v15, %v571_v45  ;;  %v594_v52 = vsel %vm593_vm6, %v483_v17, %v592_v46  ;;  %v616_v53 = vmax.f32 %v469_v7, %v1025_v28  ;;  %v532_v54 = vmax.f32 %v530_v41, %v531_v48 }
 0x17e   : > { %v546_v55 = vmax.f32 %v544_v30, %v545_v49  ;;  %v617_v56 = vmax.f32 %v476_v16, %v1031_v43  ;;  %v618_v57 = vmax.f32 %v483_v17, %v511_v24  ;;  %v619_v59 = vmax.f32 %v490_v36, %v518_v33 }
 0x17f   : > { %v573_v58 = vrot.slane %v572_v51, 1  ;;  %v620_v60 = vmax.f32 %v616_v53, %v525_v47  ;;  %v596_v61 = vsel %vm595_vm7, %v490_v36, %v594_v52  ;;  %v605_v62 = vsel %vm591_vm5, %v532_v54, %v525_v47 }
 0x180   : > { %v621_v63 = vmax.f32 %v617_v56, %v532_v54  ;;  %v622_v0 = vmax.f32 %v618_v57, %v539_v50  ;;  %v598_v1 = vsel %vm597_vm8, %v1025_v28, %v596_v61  ;;  %v567_v2 = vmax.f32 %v565_v39, %v566_v35 }
 0x181   : > { %v574_v3 = vmax.f32 %v572_v51, %v573_v58  ;;  %v606_v4 = vsel %vm593_vm6, %v539_v50, %v605_v62  ;;  %v623_v5 = vmax.f32 %v619_v59, %v546_v55  ;;  %v624_v6 = vmax.f32 %v620_v60, %v553_v42 }
 0x182   : > { %v607_v38 = vsel %vm595_vm7, %v546_v55, %v606_v4  ;;  %v625_v7 = vmax.f32 %v621_v63, %v560_v44  ;;  %v600_v8 = vsel %vm599_vm9, %v1031_v43, %v598_v1  ;;  %v626_v10 = vmax.f32 %v622_v0, %v567_v2 }
 0x183   : > { %v608_v9 = vsel %vm597_vm8, %v553_v42, %v607_v38  ;;  %v627_v11 = vmax.f32 %v623_v5, %v574_v3  ;;  %v602_v12 = vsel %vm601_vm10, %v511_v24, %v600_v8 }
 0x184   : > { %v609_v28 = vsel %vm599_vm9, %v560_v44, %v608_v9  ;;  %v604_v13 = vsel %vm603_vm11, %v518_v33, %v602_v12  ;;  %v628_v15 = vmax.f32 %v624_v6, %v625_v7 }
 0x185   : > { %v610_v14 = vsel %vm601_vm10, %v567_v2, %v609_v28  ;;  %v629_v16 = vmax.f32 %v626_v10, %v627_v11  ;;  %614 = vst [vmem:[%s191_s22] sm:$0xff] %v604_v13 }
 0x186   : > { %v611_v43 = vsel %vm603_vm11, %v574_v3, %v610_v14 }
 0x187   : > { %v630_v17 = vmax.f32 %v628_v15, %v629_v16  ;;  %615 = vst [vmem:[%s191_s22 + $0x8] sm:$0xff] %v611_v43 }
 0x189   : > { %631 = vmax.xlane.f32.xlu0 %v630_v17 }
 0x18a   : > { %835 = shalt.err (!%p832_p3)
}
 0x18b   : > { %s836_s11 = scalar_lea.hbm %s1072_s29, 256  ;;  %s840_s14 = scalar_lea.hbm %s1126_s3, 512 }
 0x18c   : > { %p837_p4 = scmp.ne.s32.totalorder %s1072_s29, %s836_s11  ;;  %p841_p9 = scmp.lt.s32.totalorder %s1072_s29, %s1126_s3 }
 0x18d   : > { %p842_p10 = scmp.lt.s32.totalorder %s840_s14, %s836_s11 }
 0x18e   : > { %p838_p7 = pnand %p837_p4, %p952_p5 }
 0x18f   : > { %p843_p11 = por %p842_p10, %p841_p9 }
 0x190   : > { %p839_p8 = pneg %p838_p7 }
 0x192   : > { %p844_p12 = pnand %p843_p11, %p839_p8 }
 0x194   : > { %847 = shalt.err (!%p844_p12)
}
 0x195   : > { %s888_s23 = smov 128   ;;  %s204_s7 = scalar_lea.vmem %s1127_s4, %s970_s5  ;;  %vm635_vm12 = vcmask 0  }
 0x196   : > { %779 = dma.vmem_to_hbm [thread:$0]  (%p952_p5), %s1074_s30, 256, %s1072_s29, %s1078_s6, %s888_s23, %s888_s23, %s884_s10  }
 0x212   : > { %v632_v18 = vpop.xlane.xlu0 %631 }
 0x213   : > { %777 = vpush %v632_v18 }
 0x244   : > { %s778_s19 = spop %777 }
 0x245   : > { %v634_v19 = vstv %s778_s19 }
 0x246   : > { %636 = vst.msk [vmem:[%s204_s7] sm:$0x1] %vm635_vm12, %v634_v19 }
 0x247 PF: > { %p785_p13 = scmp.ge.s32.totalorder %s882_s18, 2  ;;  %s672_s25 = sand.u32 1, %s870_s15  }
 0x248   : > { %s673_s10 = scalar_lea.sflag [#allocation3], %s672_s25 }
 0x249   : > { %p782_p0 = pnand %p785_p13, %p956_p6 }
 0x24b   : > { %p783_p1 = pneg %p782_p0 }
 0x24d   : > { %865 = dma.done.wait (%p783_p1), %s673_s10, 256  }
 0x24e   : > { %867 = vsyncadd (%p783_p1), %s673_s10, 4294967040  ;;  %p15_p5 = scmp.ge.s32.totalorder %s939_s21, 4   ;;  %s1130_s15 = smov %s874_s16 }
 0x24f   : > { %s1131_s16 = smov %s878_s17  ;;  %s1132_s17 = smov %s950_s24 }
 0x250   : > { %s1133_s18 = smov %s939_s21  ;;  %17 = sbr.rel (!%p15_p5) target bundleno = 3 (0x3), region = 79 }
 0x255   :  { %684 = vsyncpa [#allocation3], 1 }
 0x256   :  { %686 = vsyncpa [#allocation3 + $0x1], 1 }

</bundles_post_ra>
